<compile_context>
chip_gen: v5e
topology: v5e:2x2
jax: 0.10.0
libtpu: 0.0.40
codegen_flags: <defaults>
</compile_context>

<pallas_src>
import jax
import jax.numpy as jnp
from jax import lax
from jax.experimental import pallas as pl
from jax.experimental.pallas import tpu as pltpu

LANE = 128
F32 = jnp.float32
BF16 = jnp.bfloat16


# ---------------- helpers ----------------

def _round_up(x, m):
    return (x + m - 1) // m * m


def _pad2(a, rows, cols):
    return jnp.pad(a, ((0, rows - a.shape[0]), (0, cols - a.shape[1])))


def _pick_tile(n_pad, max_tile, min_blocks=1):
    """Largest multiple of 128 dividing n_pad, <= max_tile, yielding >= min_blocks blocks."""
    best = LANE
    t = LANE
    while t <= min(max_tile, n_pad):
        if n_pad % t == 0 and n_pad // t >= min_blocks:
            best = t
        t += LANE
    return best


# ---------------- Pallas kernels (closures over static tiling params) ----------------

def make_layer1_kernel(tm, tk, n_k, n_valid, x_resident):
    # H1_tile = relu((A @ X) @ W1 + b1); padded node rows zeroed.
    def kernel(mask_ref, a_ref, x_ref, w_ref, b_ref, h_ref, acc_ref):
        i = pl.program_id(0)
        k = pl.program_id(1)

        @pl.when(k == 0)
        def _():
            acc_ref[...] = jnp.zeros_like(acc_ref)

        # Skip MXU work for all-zero adjacency blocks (block-sparse A).
        @pl.when(mask_ref[i * n_k + k] != 0)
        def _():
            if x_resident:
                off = pl.multiple_of(k * tk, tk)
                x_tile = x_ref[pl.ds(off, tk), :]
            else:
                x_tile = x_ref[...]
            acc_ref[...] += jnp.dot(a_ref[...], x_tile,
                                    preferred_element_type=jnp.float32)

        @pl.when(k == n_k - 1)
        def _():
            ax = acc_ref[...].astype(jnp.bfloat16)
            h = jnp.dot(ax, w_ref[...], preferred_element_type=jnp.float32) + b_ref[...]
            h = jnp.maximum(h, 0.0)
            rows = i * tm + lax.broadcasted_iota(jnp.int32, h.shape, 0)
            h = jnp.where(rows < n_valid, h, 0.0)          # zero padded node rows
            h_ref[...] = h.astype(h_ref.dtype)

    return kernel


def make_layer2_pool_kernel(tm, tk, n_k, n_valid, h1_resident):
    # H2_tile = relu((A @ H1) @ W2 + b2); fused per-row-tile partial mean-pool.
    def kernel(mask_ref, a_ref, h1_ref, w_ref, b_ref, p_ref, out_ref, acc_ref):
        i = pl.program_id(0)
        k = pl.program_id(1)

        @pl.when(k == 0)
        def _():
            acc_ref[...] = jnp.zeros_like(acc_ref)

        @pl.when(mask_ref[i * n_k + k] != 0)
        def _():
            if h1_resident:
                off = pl.multiple_of(k * tk, tk)
                h1_tile = h1_ref[pl.ds(off, tk), :]
            else:
                h1_tile = h1_ref[...]
            acc_ref[...] += jnp.dot(a_ref[...], h1_tile,
                                    preferred_element_type=jnp.float32)

        @pl.when(k == n_k - 1)
        def _():
            ah = acc_ref[...].astype(jnp.bfloat16)
            h2 = jnp.dot(ah, w_ref[...], preferred_element_type=jnp.float32) + b_ref[...]
            h2 = jnp.maximum(h2, 0.0)
            rows = i * tm + lax.broadcasted_iota(jnp.int32, h2.shape, 0)
            h2 = jnp.where(rows < n_valid, h2, 0.0)        # zero padded node rows
            pooled = jnp.dot(p_ref[...], h2.astype(jnp.bfloat16),
                             preferred_element_type=jnp.float32)
            out_ref[...] = pooled[None, :, :]

    return kernel


# ---------------- JAX glue (graph -> dense operators) ----------------

def build_norm_adj(edge_index, num_nodes, n_pad, dtype=BF16):
    # GCN normalization with self-loops: A_hat = D^-1/2 (A + I) D^-1/2 (PyG convention).
    # Built directly in the final dtype at the padded shape (no extra N^2 cast pass).
    src = edge_index[0].astype(jnp.int32)
    dst = edge_index[1].astype(jnp.int32)
    loops = jnp.arange(num_nodes, dtype=jnp.int32)
    src = jnp.concatenate([src, loops])
    dst = jnp.concatenate([dst, loops])
    deg = jnp.zeros((num_nodes,), F32).at[dst].add(jnp.ones(src.shape[0], F32))
    dinv = jnp.where(deg > 0, lax.rsqrt(deg), 0.0)
    vals = (dinv[dst] * dinv[src]).astype(dtype)
    return jnp.zeros((n_pad, n_pad), dtype).at[dst, src].add(vals)


def build_block_mask(edge_index, num_nodes, tm, tk, n_i, n_k):
    # 1 iff the (tm, tk) adjacency block contains any edge (incl. self-loops). 1D for SMEM.
    src = edge_index[0].astype(jnp.int32)
    dst = edge_index[1].astype(jnp.int32)
    loops = jnp.arange(num_nodes, dtype=jnp.int32)
    rows = jnp.concatenate([dst, loops]) // tm
    cols = jnp.concatenate([src, loops]) // tk
    ones = jnp.ones(rows.shape, jnp.int32)
    return jnp.zeros((n_i * n_k,), jnp.int32).at[rows * n_k + cols].max(ones)


def build_pool_mat(batch, num_graphs):
    onehot = (batch[None, :] == jnp.arange(num_graphs)[:, None]).astype(F32)
    counts = onehot.sum(axis=1, keepdims=True)
    return onehot / jnp.maximum(counts, 1.0)


# ---------------- forward wrapper ----------------

def gcn_encoder(x, edge_index, batch, params, num_graphs, *,
                max_tm=512, max_tk=2048, resident_budget_bytes=8 * 2**20):
    n, f_in = x.shape
    h_dim = params["w1"].shape[1]

    n_pad = _round_up(n, LANE)          # pad nodes only to lane multiple (bounded waste)
    f_pad = _round_up(f_in, LANE)
    h_pad = _round_up(h_dim, LANE)
    g_pad = _round_up(num_graphs, 8)

    tm = _pick_tile(n_pad, max_tm, min_blocks=2)   # >=2 row tiles when possible (v7x megacore)
    tk = _pick_tile(n_pad, max_tk, min_blocks=1)
    n_i = n_pad // tm
    n_k = n_pad // tk

    # residency decisions for the dense right-hand operands (double-buffer counted below)
    x_res = n_pad * f_pad * 2 <= resident_budget_bytes
    h1_res = n_pad * h_pad * 2 <= resident_budget_bytes

    # dense operators, padded lane-dense; bf16 matmul inputs, f32 bias/accumulation
    a = build_norm_adj(edge_index, n, n_pad)                    # bf16, built padded directly
    mask = build_block_mask(edge_index, n, tm, tk, n_i, n_k)    # int32, scalar prefetch
    xp = _pad2(x, n_pad, f_pad).astype(BF16)
    w1 = _pad2(params["w1"], f_pad, h_pad).astype(BF16)
    w2 = _pad2(params["w2"], h_pad, h_pad).astype(BF16)
    b1 = jnp.pad(params["b1"], (0, h_pad - h_dim)).reshape(1, h_pad).astype(F32)
    b2 = jnp.pad(params["b2"], (0, h_pad - h_dim)).reshape(1, h_pad).astype(F32)
    p = _pad2(build_pool_mat(batch, num_graphs), g_pad, n_pad).astype(BF16)

    def make_cparams(rhs_bytes, acc_bytes):
        est = (2 * tm * tk * 2                       # A tiles, double-buffered bf16
               + rhs_bytes                           # resident (2x) or streamed X/H1
               + 2 * (f_pad * h_pad * 2 + h_pad * 4)  # weights + bias
               + 2 * tm * h_pad * 2                  # output tile
               + 2 * g_pad * tm * 2                  # pool tiles (layer 2)
               + acc_bytes)                          # f32 accumulator scratch
        limit = int(min(48 * 2**20, max(32 * 2**20, 2 * est)))   # headroom on v7x's 64 MiB VMEM
        return pltpu.CompilerParams(
            dimension_semantics=("parallel", "arbitrary"),
            vmem_limit_bytes=limit)

    # ---- layer 1: H1 = relu((A @ X) @ W1 + b1) ----
    x_spec = (pl.BlockSpec((n_pad, f_pad), lambda i, k, m: (0, 0)) if x_res
              else pl.BlockSpec((tk, f_pad), lambda i, k, m: (k, 0)))
    h1 = pl.pallas_call(
        make_layer1_kernel(tm, tk, n_k, n, x_res),
        out_shape=jax.ShapeDtypeStruct((n_pad, h_pad), BF16),
        grid_spec=pltpu.PrefetchScalarGridSpec(
            num_scalar_prefetch=1,
            grid=(n_i, n_k),
            in_specs=[
                pl.BlockSpec((tm, tk), lambda i, k, m: (i, k)),         # A_hat tile
                x_spec,                                                  # X (resident/streamed)
                pl.BlockSpec((f_pad, h_pad), lambda i, k, m: (0, 0)),    # W1 (resident)
                pl.BlockSpec((1, h_pad), lambda i, k, m: (0, 0)),        # b1 (resident)
            ],
            out_specs=pl.BlockSpec((tm, h_pad), lambda i, k, m: (i, 0)),
            scratch_shapes=[pltpu.VMEM((tm, f_pad), jnp.float32)],
        ),
        compiler_params=make_cparams(
            2 * n_pad * f_pad * 2 if x_res else 2 * tk * f_pad * 2, tm * f_pad * 4),
    )(mask, a, xp, w1, b1)

    # ---- layer 2 + fused mean pool: per-row-tile partial pools, tiny sum outside ----
    h1_spec = (pl.BlockSpec((n_pad, h_pad), lambda i, k, m: (0, 0)) if h1_res
               else pl.BlockSpec((tk, h_pad), lambda i, k, m: (k, 0)))
    pooled_parts = pl.pallas_call(
        make_layer2_pool_kernel(tm, tk, n_k, n, h1_res),
        out_shape=jax.ShapeDtypeStruct((n_i, g_pad, h_pad), jnp.float32),
        grid_spec=pltpu.PrefetchScalarGridSpec(
            num_scalar_prefetch=1,
            grid=(n_i, n_k),
            in_specs=[
                pl.BlockSpec((tm, tk), lambda i, k, m: (i, k)),          # A_hat tile
                h1_spec,                                                  # H1 (resident/streamed)
                pl.BlockSpec((h_pad, h_pad), lambda i, k, m: (0, 0)),     # W2 (resident)
                pl.BlockSpec((1, h_pad), lambda i, k, m: (0, 0)),         # b2 (resident)
                pl.BlockSpec((g_pad, tm), lambda i, k, m: (0, i)),        # pool matrix slice
            ],
            out_specs=pl.BlockSpec((1, g_pad, h_pad), lambda i, k, m: (i, 0, 0)),
            scratch_shapes=[pltpu.VMEM((tm, h_pad), jnp.float32)],
        ),
        compiler_params=make_cparams(
            2 * n_pad * h_pad * 2 if h1_res else 2 * tk * h_pad * 2, tm * h_pad * 4),
    )(mask, a, h1, w2, b2, p)

    pooled = pooled_parts.sum(axis=0)       # tiny (n_i, G_pad, H_pad) reduction in XLA
    return pooled[:num_graphs, :h_dim]


# ---------------- pure-JAX reference (same bf16-in / f32-acc dtype policy) ----------------

def gcn_encoder_ref(x, edge_index, batch, params, num_graphs):
    n = x.shape[0]
    a = build_norm_adj(edge_index, n, n)                # bf16, same construction as kernel path
    xb = x.astype(BF16)
    w1 = params["w1"].astype(BF16)
    w2 = params["w2"].astype(BF16)

    ax = jnp.dot(a, xb, preferred_element_type=F32)
    h1 = jnp.maximum(jnp.dot(ax.astype(BF16), w1, preferred_element_type=F32)
                     + params["b1"], 0.0)
    ah = jnp.dot(a, h1.astype(BF16), preferred_element_type=F32)
    h2 = jnp.maximum(jnp.dot(ah.astype(BF16), w2, preferred_element_type=F32)
                     + params["b2"], 0.0)

    p = build_pool_mat(batch, num_graphs).astype(BF16)
    return jnp.dot(p, h2.astype(BF16), preferred_element_type=F32)


# ---------------- main ----------------

if __name__ == "__main__":
    input_dim, hidden_dim = 8, 32
    num_nodes, num_graphs = 16, 2
    nodes_per_graph = num_nodes // num_graphs

    key = jax.random.PRNGKey(0)
    k_x, k_e0, k_e1, k_w1, k_w2 = jax.random.split(key, 5)

    # node features
    x = jax.random.normal(k_x, (num_nodes, input_dim), dtype=jnp.float32)

    # edges kept within each of the 2 graphs
    e_per_graph = 20
    src0 = jax.random.randint(k_e0, (e_per_graph,), 0, nodes_per_graph)
    dst0 = jax.random.randint(k_e1, (e_per_graph,), 0, nodes_per_graph)
    src = jnp.concatenate([src0, src0 + nodes_per_graph]).astype(jnp.int32)
    dst = jnp.concatenate([dst0, dst0 + nodes_per_graph]).astype(jnp.int32)
    edge_index = jnp.stack([src, dst], axis=0)  # (2, E)

    # batch vector: graph id per node
    batch = jnp.repeat(jnp.arange(num_graphs, dtype=jnp.int32), nodes_per_graph)

    # deterministic glorot-style parameter init (GCNConv: W (F_in,F_out), bias (F_out,))
    def glorot(k, fan_in, fan_out):
        s = jnp.sqrt(6.0 / (fan_in + fan_out))
        return jax.random.uniform(k, (fan_in, fan_out), jnp.float32, -s, s)

    params = {
        "w1": glorot(k_w1, input_dim, hidden_dim),
        "b1": jnp.zeros((hidden_dim,), jnp.float32),
        "w2": glorot(k_w2, hidden_dim, hidden_dim),
        "b2": jnp.zeros((hidden_dim,), jnp.float32),
    }

    out = gcn_encoder(x, edge_index, batch, params, num_graphs)
    out = jax.block_until_ready(out)

    ref = gcn_encoder_ref(x, edge_index, batch, params, num_graphs)
    assert out.shape == (num_graphs, hidden_dim)
    assert jnp.allclose(out, ref, atol=1e-2, rtol=1e-2), (
        float(jnp.max(jnp.abs(out - ref))))

    print("KERNEL_OK")
</pallas_src>

<mosaic_0001>
module attributes {stable_mosaic.version = 11 : i64} {
  func.func @kernel(%arg0: i32, %arg1: i32, %arg2: memref<1xi32, #tpu.memory_space<smem>>, %arg3: memref<128x128xbf16, #tpu.memory_space<vmem>>, %arg4: memref<128x128xbf16, #tpu.memory_space<vmem>>, %arg5: memref<128x128xbf16, #tpu.memory_space<vmem>>, %arg6: memref<1x128xf32, #tpu.memory_space<vmem>>, %arg7: memref<128x128xbf16, #tpu.memory_space<vmem>>, %arg8: memref<128x128xf32, #tpu.memory_space<vmem>>) attributes {dimension_semantics = [#tpu.dimension_semantics<parallel>, #tpu.dimension_semantics<arbitrary>], iteration_bounds = array<i64: 1, 1>, scalar_prefetch = 1 : i64, scratch_operands = 1 : i64, tpu.core_type = #tpu.core_type<tc>, window_params = [{transform_indices = @transform_0, window_bounds = array<i64: 128, 128>}, {pipeline_mode = #tpu.pipeline_mode<synchronous>, transform_indices = @transform_1, window_bounds = array<i64: 128, 128>}, {pipeline_mode = #tpu.pipeline_mode<synchronous>, transform_indices = @transform_2, window_bounds = array<i64: 128, 128>}, {pipeline_mode = #tpu.pipeline_mode<synchronous>, transform_indices = @transform_3, window_bounds = array<i64: 1, 128>}, {transform_indices = @transform_4, window_bounds = array<i64: 128, 128>}]} {
    %c0_i32 = arith.constant 0 : i32
    %0 = arith.cmpi eq, %arg1, %c0_i32 : i32
    %1 = arith.extui %0 : i1 to i32
    %c0_i32_0 = arith.constant 0 : i32
    %2 = arith.cmpi ne, %1, %c0_i32_0 : i32
    scf.if %2 {
      %cst = arith.constant 0.000000e+00 : f32
      %13 = vector.broadcast %cst : f32 to vector<128x128xf32>
      %c0 = arith.constant 0 : index
      %c0_5 = arith.constant 0 : index
      %14 = vector.load %arg8[%c0, %c0_5] : memref<128x128xf32, #tpu.memory_space<vmem>>, vector<128x128xf32>
      tpu.vector_store %arg8[%c0, %c0_5], %13 {strides = array<i32>} : memref<128x128xf32, #tpu.memory_space<vmem>>, vector<128x128xf32>,
    } else {
    }
    %c1_i32 = arith.constant 1 : i32
    %3 = arith.muli %arg0, %c1_i32 : i32
    %4 = arith.addi %3, %arg1 : i32
    %5 = arith.index_cast %4 : i32 to index
    %6 = memref.load %arg2[%5] : memref<1xi32, #tpu.memory_space<smem>>
    %c0_i32_1 = arith.constant 0 : i32
    %7 = arith.cmpi ne, %6, %c0_i32_1 : i32
    %8 = arith.extui %7 : i1 to i32
    %c0_i32_2 = arith.constant 0 : i32
    %9 = arith.cmpi ne, %8, %c0_i32_2 : i32
    scf.if %9 {
      %c128_i32 = arith.constant 128 : i32
      %13 = arith.muli %arg1, %c128_i32 : i32
      %14 = tpu.assume_multiple %13, 128 : i32
      %15 = arith.index_cast %14 : i32 to index
      %c0 = arith.constant 0 : index
      %16 = vector.load %arg4[%15, %c0] : memref<128x128xbf16, #tpu.memory_space<vmem>>, vector<128x128xbf16>
      %c0_5 = arith.constant 0 : index
      %c0_6 = arith.constant 0 : index
      %17 = vector.load %arg8[%c0_5, %c0_6] : memref<128x128xf32, #tpu.memory_space<vmem>>, vector<128x128xf32>
      %c0_7 = arith.constant 0 : index
      %c0_8 = arith.constant 0 : index
      %18 = vector.load %arg3[%c0_7, %c0_8] : memref<128x128xbf16, #tpu.memory_space<vmem>>, vector<128x128xbf16>
      %cst = arith.constant dense<0.000000e+00> : vector<128x128xf32>
      %19 = tpu.matmul %18, %16, %cst {dimension_numbers = #tpu.dot_dimension_numbers<[1], [0], [0], [1], [0, 0, 1, 1], [], []>} : vector<128x128xbf16>, vector<128x128xbf16>, vector<128x128xf32> -> vector<128x128xf32>
      %20 = arith.addf %17, %19 : vector<128x128xf32>
      %c0_9 = arith.constant 0 : index
      %c0_10 = arith.constant 0 : index
      %21 = vector.load %arg8[%c0_9, %c0_10] : memref<128x128xf32, #tpu.memory_space<vmem>>, vector<128x128xf32>
      tpu.vector_store %arg8[%c0_9, %c0_10], %20 {strides = array<i32>} : memref<128x128xf32, #tpu.memory_space<vmem>>, vector<128x128xf32>,
    } else {
    }
    %c0_i32_3 = arith.constant 0 : i32
    %10 = arith.cmpi eq, %arg1, %c0_i32_3 : i32
    %11 = arith.extui %10 : i1 to i32
    %c0_i32_4 = arith.constant 0 : i32
    %12 = arith.cmpi ne, %11, %c0_i32_4 : i32
    scf.if %12 {
      %c0 = arith.constant 0 : index
      %c0_5 = arith.constant 0 : index
      %13 = vector.load %arg8[%c0, %c0_5] : memref<128x128xf32, #tpu.memory_space<vmem>>, vector<128x128xf32>
      %14 = arith.truncf %13 : vector<128x128xf32> to vector<128x128xbf16>
      %c0_6 = arith.constant 0 : index
      %c0_7 = arith.constant 0 : index
      %15 = vector.load %arg5[%c0_6, %c0_7] : memref<128x128xbf16, #tpu.memory_space<vmem>>, vector<128x128xbf16>
      %cst = arith.constant dense<0.000000e+00> : vector<128x128xf32>
      %16 = tpu.matmul %14, %15, %cst {dimension_numbers = #tpu.dot_dimension_numbers<[1], [0], [0], [1], [0, 0, 1, 1], [], []>} : vector<128x128xbf16>, vector<128x128xbf16>, vector<128x128xf32> -> vector<128x128xf32>
      %c0_8 = arith.constant 0 : index
      %c0_9 = arith.constant 0 : index
      %17 = vector.load %arg6[%c0_8, %c0_9] : memref<1x128xf32, #tpu.memory_space<vmem>>, vector<1x128xf32>
      %18 = vector.broadcast %17 : vector<1x128xf32> to vector<128x128xf32>
      %19 = arith.addf %16, %18 : vector<128x128xf32>
      %cst_10 = arith.constant 0.000000e+00 : f32
      %20 = vector.broadcast %cst_10 : f32 to vector<128x128xf32>
      %21 = arith.maximumf %19, %20 : vector<128x128xf32>
      %c128_i32 = arith.constant 128 : i32
      %22 = arith.muli %arg0, %c128_i32 : i32
      %23 = tpu.iota {dimensions = array<i32: 0>} : vector<128x128xi32>
      %24 = vector.broadcast %22 : i32 to vector<128x128xi32>
      %25 = arith.addi %24, %23 : vector<128x128xi32>
      %c16_i32 = arith.constant 16 : i32
      %26 = vector.broadcast %c16_i32 : i32 to vector<128x128xi32>
      %27 = arith.cmpi slt, %25, %26 : vector<128x128xi32>
      %cst_11 = arith.constant 0.000000e+00 : f32
      %28 = vector.broadcast %cst_11 : f32 to vector<128x128xf32>
      %29 = arith.select %27, %21, %28 : vector<128x128xi1>, vector<128x128xf32>
      %30 = arith.truncf %29 : vector<128x128xf32> to vector<128x128xbf16>
      %c0_12 = arith.constant 0 : index
      %c0_13 = arith.constant 0 : index
      %31 = vector.load %arg7[%c0_12, %c0_13] : memref<128x128xbf16, #tpu.memory_space<vmem>>, vector<128x128xbf16>
      tpu.vector_store %arg7[%c0_12, %c0_13], %30 {strides = array<i32>} : memref<128x128xbf16, #tpu.memory_space<vmem>>, vector<128x128xbf16>,
    } else {
    }
    return
  }
  func.func @transform_0(%arg0: i32, %arg1: i32, %arg2: memref<1xi32, #tpu.memory_space<smem>>) -> (i32, i32) {
    %c0_i32 = arith.constant 0 : i32
    return %arg0, %arg1 : i32, i32
  }
  func.func @transform_1(%arg0: i32, %arg1: i32, %arg2: memref<1xi32, #tpu.memory_space<smem>>) -> (i32, i32) {
    %c0_i32 = arith.constant 0 : i32
    %c0_i32_0 = arith.constant 0 : i32
    %c0_i32_1 = arith.constant 0 : i32
    return %c0_i32, %c0_i32_0 : i32, i32
  }
  func.func @transform_2(%arg0: i32, %arg1: i32, %arg2: memref<1xi32, #tpu.memory_space<smem>>) -> (i32, i32) {
    %c0_i32 = arith.constant 0 : i32
    %c0_i32_0 = arith.constant 0 : i32
    %c0_i32_1 = arith.constant 0 : i32
    return %c0_i32, %c0_i32_0 : i32, i32
  }
  func.func @transform_3(%arg0: i32, %arg1: i32, %arg2: memref<1xi32, #tpu.memory_space<smem>>) -> (i32, i32) {
    %c0_i32 = arith.constant 0 : i32
    %c0_i32_0 = arith.constant 0 : i32
    %c0_i32_1 = arith.constant 0 : i32
    return %c0_i32, %c0_i32_0 : i32, i32
  }
  func.func @transform_4(%arg0: i32, %arg1: i32, %arg2: memref<1xi32, #tpu.memory_space<smem>>) -> (i32, i32) {
    %c0_i32 = arith.constant 0 : i32
    %c0_i32_0 = arith.constant 0 : i32
    return %arg0, %c0_i32 : i32, i32
  }
}

</mosaic_0001>

<bundles_post_ra>
// kernel: tpu_custom_call.1
= control target key start
LH: loop header
LB: loop body
LE: loop exit
PB: predicated region body
PF: predicated region fallthrough
CT: control target
= control target key end

     0   :  { %11 = vsyncpa [#allocation6], 0  ;;  %s999_s0 = inlined_call_operand.<no memory space> [shape: s32[1], index: 0, kind: input, shape index: {}]   ;;  %s1000_s1 = inlined_call_operand.hbm [shape: bf16[128,128], index: 1, kind: input, shape index: {}]   ;;  %s1001_s2 = inlined_call_operand.hbm [shape: bf16[128,128], index: 2, kind: input, shape index: {}]   ;;  %s1002_s3 = inlined_call_operand.hbm [shape: bf16[128,128], index: 3, kind: input, shape index: {}]   ;;  %s1003_s4 = inlined_call_operand.vmem [shape: f32[1,128], index: 4, kind: input, shape index: {}]   ;;  %s1004_s5 = inlined_call_operand.hbm [shape: bf16[128,128], index: 5, kind: output, shape index: {}]  }
   0x1   :  { %12 = vsyncpa [#allocation9], 0 }
   0x2   :  { %13 = vsyncpa [#allocation7], 0  ;;  %s31_s20 = sshll.u32 %s1001_s2, 4  ;;  %s931_s21 = smov [#allocation8]   ;;  %s32_s20 = int_to_ptr.hbm [resolvable:$true] %s31_s20 }
   0x3   :  { %s33_s22 = sshll.u32 %s931_s21, 4  ;;  %s18_s25 = sshll.u32 %s1000_s1, 4  ;;  %s34_s22 = int_to_ptr.vmem [resolvable:$true] %s33_s22  ;;  %s19_s25 = int_to_ptr.hbm [resolvable:$true] %s18_s25 }
   0x4   :  { %s932_s26 = smov 64   ;;  %s933_s27 = smov 4  }
   0x5   :  { %39 = dma.hbm_to_vmem [thread:$0]  %s32_s20, 1024, %s34_s22, [#allocation9], %s932_s26, %s932_s26, %s933_s27  }
   0x6   :  { %s934_s28 = smov [#allocation5]   ;;  %s44_s2 = sshll.u32 %s1002_s3, 4  ;;  %s45_s2 = int_to_ptr.hbm [resolvable:$true] %s44_s2 }
   0x7   :  { %s20_s29 = sshll.u32 %s934_s28, 4  ;;  %s935_s1 = smov [#allocation10]   ;;  %s21_s29 = int_to_ptr.vmem [resolvable:$true] %s20_s29 }
   0x8   :  { %26 = dma.hbm_to_vmem [thread:$0]  %s19_s25, 1024, %s21_s29, [#allocation6], %s932_s26, %s932_s26, %s933_s27  }
   0x9   :  { %s46_s7 = sshll.u32 %s935_s1, 4  ;;  %s47_s7 = int_to_ptr.vmem [resolvable:$true] %s46_s7 }
   0xa   :  { %52 = dma.hbm_to_vmem [thread:$0]  %s45_s2, 1024, %s47_s7, [#allocation9], %s932_s26, %s932_s26, %s933_s27  }
   0xb   :  { %925 = dma.done.wait [#allocation6], 1024  }
   0xc   :  { %926 = vsyncadd [#allocation6], 4294966272 }
   0xd   :  { %927 = dma.done.wait [#allocation9], 2048  }
   0xe   :  { %928 = vsyncadd [#allocation9], 4294965248  ;;  %v936_v0 = vmov 0.0   ;;  %p604_p0 = scmp.eq.s32.totalorder %s999_s0, 0 }
   0xf   :  { %71 = vst [vmem:[#allocation2 + $0x30] sm:$0xff] %v936_v0 }
  0x10   :  { %72 = vst [vmem:[#allocation2] sm:$0xff] %v936_v0 }
  0x11   :  { %73 = vst [vmem:[#allocation2 + $0x58] sm:$0xff] %v936_v0 }
  0x12   :  { %74 = vst [vmem:[#allocation2 + $0x18] sm:$0xff] %v936_v0 }
  0x13   :  { %75 = vst [vmem:[#allocation2 + $0x50] sm:$0xff] %v936_v0 }
  0x14   :  { %76 = vst [vmem:[#allocation2 + $0x68] sm:$0xff] %v936_v0 }
  0x15   :  { %77 = vst [vmem:[#allocation2 + $0x8] sm:$0xff] %v936_v0 }
  0x16   :  { %78 = vst [vmem:[#allocation2 + $0x48] sm:$0xff] %v936_v0 }
  0x17   :  { %79 = vst [vmem:[#allocation2 + $0x40] sm:$0xff] %v936_v0 }
  0x18   :  { %80 = vst [vmem:[#allocation2 + $0x20] sm:$0xff] %v936_v0 }
  0x19   :  { %81 = vst [vmem:[#allocation2 + $0x10] sm:$0xff] %v936_v0 }
  0x1a   :  { %82 = vst [vmem:[#allocation2 + $0x38] sm:$0xff] %v936_v0  ;;  %92 = sbr.rel (%p604_p0) target bundleno = 224 (0xe0), region = 37 }
  0x1b   :  { %83 = vst [vmem:[#allocation2 + $0x60] sm:$0xff] %v936_v0 }
  0x1c   :  { %84 = vst [vmem:[#allocation2 + $0x70] sm:$0xff] %v936_v0 }
  0x1d   :  { %85 = vst [vmem:[#allocation2 + $0x78] sm:$0xff] %v936_v0 }
  0x1e   :  { %86 = vst [vmem:[#allocation2 + $0x28] sm:$0xff] %v936_v0 }
  0x1f   :  { %v708_v1 = vld [vmem:[#allocation8 + $0x38] sm:$0xff]  ;;  %v707_v2 = vld [vmem:[#allocation8 + $0x30] sm:$0xff]  ;;  %v706_v3 = vld [vmem:[#allocation8 + $0x28] sm:$0xff] }
  0x20   :  { %242 = vmatpush.bf16.msra.mxu0 %v708_v1  ;;  %772 = vmatpush.bf16.msra.mxu1 %v708_v1  ;;  %v705_v4 = vld [vmem:[#allocation8 + $0x20] sm:$0xff]  ;;  %v704_v5 = vld [vmem:[#allocation8 + $0x18] sm:$0xff]  ;;  %v703_v6 = vld [vmem:[#allocation8 + $0x10] sm:$0xff] }
  0x21   :  { %773 = vmatpush.bf16.msra.mxu2 %v708_v1  ;;  %774 = vmatpush.bf16.msra.mxu3 %v708_v1  ;;  %v702_v7 = vld [vmem:[#allocation8 + $0x8] sm:$0xff]  ;;  %v701_v8 = vld [vmem:[#allocation8] sm:$0xff]  ;;  %v711_v10 = vld [vmem:[#allocation5 + $0x10] sm:$0xff] }
  0x22   :  { %v709_v9 = vld [vmem:[#allocation5] sm:$0xff]  ;;  %v715_v12 = vld [vmem:[#allocation5 + $0x30] sm:$0xff]  ;;  %v710_v13 = vld [vmem:[#allocation5 + $0x8] sm:$0xff] }
  0x23   :  { %v713_v11 = vld [vmem:[#allocation5 + $0x20] sm:$0xff]  ;;  %v712_v14 = vld [vmem:[#allocation5 + $0x18] sm:$0xff]  ;;  %v714_v15 = vld [vmem:[#allocation5 + $0x28] sm:$0xff] }
  0x24   :  { %243 = vmatpush.bf16.msra.mxu0 %v707_v2  ;;  %775 = vmatpush.bf16.msra.mxu1 %v707_v2  ;;  %v716_v16 = vld [vmem:[#allocation5 + $0x38] sm:$0xff]  ;;  %v114_v17 = vld [vmem:[#allocation2 + $0x30] sm:$0xff]  ;;  %v122_v23 = vld [vmem:[#allocation2 + $0x40] sm:$0xff] }
  0x25   :  { %776 = vmatpush.bf16.msra.mxu2 %v707_v2  ;;  %777 = vmatpush.bf16.msra.mxu3 %v707_v2  ;;  %v118_v18 = vld [vmem:[#allocation2 + $0x50] sm:$0xff]  ;;  %v126_v24 = vld [vmem:[#allocation2 + $0x60] sm:$0xff]  ;;  %v119_v26 = vld [vmem:[#allocation2 + $0x68] sm:$0xff] }
  0x26   :  { %v115_v25 = vld [vmem:[#allocation2] sm:$0xff]  ;;  %v127_v36 = vld [vmem:[#allocation2 + $0x70] sm:$0xff]  ;;  %v116_v37 = vld [vmem:[#allocation2 + $0x58] sm:$0xff] }
  0x27   :  { %v123_v35 = vld [vmem:[#allocation2 + $0x20] sm:$0xff]  ;;  %v120_v38 = vld [vmem:[#allocation2 + $0x8] sm:$0xff]  ;;  %v124_v47 = vld [vmem:[#allocation2 + $0x10] sm:$0xff] }
  0x28   :  { %244 = vmatpush.bf16.msra.mxu0 %v706_v3  ;;  %778 = vmatpush.bf16.msra.mxu1 %v706_v3  ;;  %v128_v48 = vld [vmem:[#allocation2 + $0x78] sm:$0xff]  ;;  %v121_v50 = vld [vmem:[#allocation2 + $0x48] sm:$0xff] }
  0x29   :  { %779 = vmatpush.bf16.msra.mxu2 %v706_v3  ;;  %780 = vmatpush.bf16.msra.mxu3 %v706_v3  ;;  %v117_v49 = vld [vmem:[#allocation2 + $0x18] sm:$0xff]  ;;  %v129_v60 = vld [vmem:[#allocation2 + $0x28] sm:$0xff] }
  0x2a   :  { %v125_v59 = vld [vmem:[#allocation2 + $0x38] sm:$0xff] }
  0x2c   :  { %245 = vmatpush.bf16.msra.mxu0 %v705_v4  ;;  %781 = vmatpush.bf16.msra.mxu1 %v705_v4 }
  0x2d   :  { %782 = vmatpush.bf16.msra.mxu2 %v705_v4  ;;  %783 = vmatpush.bf16.msra.mxu3 %v705_v4 }
  0x30   :  { %246 = vmatpush.bf16.msra.mxu0 %v704_v5  ;;  %784 = vmatpush.bf16.msra.mxu1 %v704_v5 }
  0x31   :  { %785 = vmatpush.bf16.msra.mxu2 %v704_v5  ;;  %786 = vmatpush.bf16.msra.mxu3 %v704_v5 }
  0x34   :  { %247 = vmatpush.bf16.msra.mxu0 %v703_v6  ;;  %787 = vmatpush.bf16.msra.mxu1 %v703_v6 }
  0x35   :  { %788 = vmatpush.bf16.msra.mxu2 %v703_v6  ;;  %789 = vmatpush.bf16.msra.mxu3 %v703_v6 }
  0x38   :  { %248 = vmatpush.bf16.msra.mxu0 %v702_v7  ;;  %790 = vmatpush.bf16.msra.mxu1 %v702_v7 }
  0x39   :  { %791 = vmatpush.bf16.msra.mxu2 %v702_v7  ;;  %792 = vmatpush.bf16.msra.mxu3 %v702_v7 }
  0x3c   :  { %249 = vmatpush.bf16.msra.mxu0 %v701_v8  ;;  %793 = vmatpush.bf16.msra.mxu1 %v701_v8 }
  0x3d   :  { %794 = vmatpush.bf16.msra.mxu2 %v701_v8  ;;  %795 = vmatpush.bf16.msra.mxu3 %v701_v8 }
  0x3f   :  { %250 = vmatmul.bf16.vlgmr.msra.gmra.mxu0 %v709_v9  ;;  %260 = vmatmul.bf16.vlgmr.msra.gmra.mxu1 %v711_v10 }
  0x40   :  { %270 = vmatmul.bf16.vlgmr.msra.gmra.mxu2 %v713_v11  ;;  %280 = vmatmul.bf16.vlgmr.msra.gmra.mxu3 %v715_v12 }
  0x4f   :  { %255 = vmatmul.bf16.gmra.mxu0 %v710_v13  ;;  %265 = vmatmul.bf16.gmra.mxu1 %v712_v14 }
  0x50   :  { %275 = vmatmul.bf16.gmra.mxu2 %v714_v15  ;;  %285 = vmatmul.bf16.gmra.mxu3 %v716_v16 }
  0xbc   :  { %v251_v19 = vpop.f32.mrf.mxu0  ;;  %v261_v20 = vpop.f32.mrf.mxu1 }
  0xbd   :  { %v291_v21 = vadd.f32 %v251_v19, %v114_v17  ;;  %v295_v22 = vadd.f32 %v261_v20, %v118_v18 }
  0xbf   :  { %307 = vst [vmem:[#allocation2 + $0x30] sm:$0xff] %v291_v21 }
  0xc0   :  { %311 = vst [vmem:[#allocation2 + $0x50] sm:$0xff] %v295_v22 }
  0xc3   :  { %v271_v27 = vpop.f32.mrf.mxu2  ;;  %v281_v28 = vpop.f32.mrf.mxu3 }
  0xc4   :  { %v299_v29 = vadd.f32 %v271_v27, %v122_v23  ;;  %v303_v30 = vadd.f32 %v281_v28, %v126_v24  ;;  %v253_v31 = vpop.f32.mrf.mxu0  ;;  %v263_v32 = vpop.f32.mrf.mxu1 }
  0xc5   :  { %v292_v33 = vadd.f32 %v253_v31, %v115_v25  ;;  %v296_v34 = vadd.f32 %v263_v32, %v119_v26 }
  0xc6   :  { %315 = vst [vmem:[#allocation2 + $0x40] sm:$0xff] %v299_v29 }
  0xc7   :  { %319 = vst [vmem:[#allocation2 + $0x60] sm:$0xff] %v303_v30 }
  0xc8   :  { %308 = vst [vmem:[#allocation2] sm:$0xff] %v292_v33 }
  0xc9   :  { %312 = vst [vmem:[#allocation2 + $0x68] sm:$0xff] %v296_v34 }
  0xcb   :  { %v273_v39 = vpop.f32.mrf.mxu2  ;;  %v283_v40 = vpop.f32.mrf.mxu3 }
  0xcc   :  { %v300_v41 = vadd.f32 %v273_v39, %v123_v35  ;;  %v304_v42 = vadd.f32 %v283_v40, %v127_v36  ;;  %v256_v43 = vpop.f32.mrf.mxu0  ;;  %v266_v44 = vpop.f32.mrf.mxu1 }
  0xcd   :  { %v293_v45 = vadd.f32 %v256_v43, %v116_v37  ;;  %v297_v46 = vadd.f32 %v266_v44, %v120_v38 }
  0xce   :  { %316 = vst [vmem:[#allocation2 + $0x20] sm:$0xff] %v300_v41 }
  0xcf   :  { %320 = vst [vmem:[#allocation2 + $0x70] sm:$0xff] %v304_v42 }
  0xd0   :  { %309 = vst [vmem:[#allocation2 + $0x58] sm:$0xff] %v293_v45 }
  0xd1   :  { %313 = vst [vmem:[#allocation2 + $0x8] sm:$0xff] %v297_v46 }
  0xd3   :  { %v276_v51 = vpop.f32.mrf.mxu2  ;;  %v286_v52 = vpop.f32.mrf.mxu3 }
  0xd4   :  { %v301_v53 = vadd.f32 %v276_v51, %v124_v47  ;;  %v305_v54 = vadd.f32 %v286_v52, %v128_v48  ;;  %v258_v55 = vpop.f32.mrf.mxu0  ;;  %v268_v56 = vpop.f32.mrf.mxu1 }
  0xd5   :  { %v294_v57 = vadd.f32 %v258_v55, %v117_v49  ;;  %v298_v58 = vadd.f32 %v268_v56, %v121_v50 }
  0xd6   :  { %317 = vst [vmem:[#allocation2 + $0x10] sm:$0xff] %v301_v53 }
  0xd7   :  { %321 = vst [vmem:[#allocation2 + $0x78] sm:$0xff] %v305_v54 }
  0xd8   :  { %310 = vst [vmem:[#allocation2 + $0x18] sm:$0xff] %v294_v57 }
  0xd9   :  { %314 = vst [vmem:[#allocation2 + $0x48] sm:$0xff] %v298_v58 }
  0xdb   :  { %v278_v61 = vpop.f32.mrf.mxu2  ;;  %v288_v62 = vpop.f32.mrf.mxu3 }
  0xdc   :  { %v302_v63 = vadd.f32 %v278_v61, %v125_v59  ;;  %v306_v0 = vadd.f32 %v288_v62, %v129_v60 }
  0xde   :  { %318 = vst [vmem:[#allocation2 + $0x38] sm:$0xff] %v302_v63 }
  0xdf   :  { %322 = vst [vmem:[#allocation2 + $0x28] sm:$0xff] %v306_v0 }
  0xe0 PF:  { %v724_v1 = vld [vmem:[#allocation10 + $0x38] sm:$0xff]  ;;  %v723_v2 = vld [vmem:[#allocation10 + $0x30] sm:$0xff]  ;;  %v722_v3 = vld [vmem:[#allocation10 + $0x28] sm:$0xff]  ;;  %v937_v33 = vmov 0.0|0.0   ;;  %s938_s10 = smov [#allocation11]   ;;  %s588_s14 = sshll.u32 %s1004_s5, 4  ;;  %s589_s14 = int_to_ptr.hbm [resolvable:$true] %s588_s14 }
  0xe1   :  { %418 = vmatpush.bf16.msra.mxu0 %v724_v1  ;;  %796 = vmatpush.bf16.msra.mxu1 %v724_v1  ;;  %v721_v4 = vld [vmem:[#allocation10 + $0x20] sm:$0xff]  ;;  %v720_v5 = vld [vmem:[#allocation10 + $0x18] sm:$0xff]  ;;  %v719_v6 = vld [vmem:[#allocation10 + $0x10] sm:$0xff]  ;;  %v731_v34 = vunpack.c.l.bf16 %v937_v33  ;;  %s586_s11 = sshll.u32 %s938_s10, 4  ;;  %s587_s11 = int_to_ptr.vmem [resolvable:$true] %s586_s11 }
  0xe2   :  { %797 = vmatpush.bf16.msra.mxu2 %v724_v1  ;;  %798 = vmatpush.bf16.msra.mxu3 %v724_v1  ;;  %v718_v7 = vld [vmem:[#allocation10 + $0x8] sm:$0xff]  ;;  %v717_v8 = vld [vmem:[#allocation10] sm:$0xff]  ;;  %v326_v9 = vld [vmem:[#allocation2 + $0x30] sm:$0xff] }
  0xe3   :  { %v327_v10 = vld [vmem:[#allocation2] sm:$0xff]  ;;  %v330_v11 = vld [vmem:[#allocation2 + $0x50] sm:$0xff]  ;;  %v331_v12 = vld [vmem:[#allocation2 + $0x68] sm:$0xff]  ;;  %v733_v35 = vpack.c.bf16 %v731_v34, %v731_v34 }
  0xe4   :  { %v334_v13 = vld [vmem:[#allocation2 + $0x40] sm:$0xff]  ;;  %v339_v16 = vld [vmem:[#allocation2 + $0x70] sm:$0xff]  ;;  %v342_v17 = vpack.c.bf16 %v327_v10, %v326_v9  ;;  %v344_v18 = vpack.c.bf16 %v331_v12, %v330_v11  ;;  %v328_v21 = vld [vmem:[#allocation2 + $0x58] sm:$0xff] }
  0xe5   :  { %419 = vmatpush.bf16.msra.mxu0 %v723_v2  ;;  %799 = vmatpush.bf16.msra.mxu1 %v723_v2  ;;  %v335_v14 = vld [vmem:[#allocation2 + $0x20] sm:$0xff]  ;;  %v329_v22 = vld [vmem:[#allocation2 + $0x18] sm:$0xff]  ;;  %v332_v23 = vld [vmem:[#allocation2 + $0x8] sm:$0xff]  ;;  %765 = vst [vmem:[#allocation11 + $0x8] sm:$0xff] %v733_v35  }
  0xe6   :  { %800 = vmatpush.bf16.msra.mxu2 %v723_v2  ;;  %801 = vmatpush.bf16.msra.mxu3 %v723_v2  ;;  %v338_v15 = vld [vmem:[#allocation2 + $0x60] sm:$0xff]  ;;  %v346_v19 = vpack.c.bf16 %v335_v14, %v334_v13  ;;  %v333_v24 = vld [vmem:[#allocation2 + $0x48] sm:$0xff]  ;;  %v336_v25 = vld [vmem:[#allocation2 + $0x10] sm:$0xff]  ;;  %v343_v29 = vpack.c.bf16 %v329_v22, %v328_v21  ;;  %766 = vst [vmem:[#allocation11 + $0x10] sm:$0xff] %v733_v35  }
  0xe7   :  { %v348_v20 = vpack.c.bf16 %v339_v16, %v338_v15  ;;  %v337_v26 = vld [vmem:[#allocation2 + $0x38] sm:$0xff]  ;;  %v341_v28 = vld [vmem:[#allocation2 + $0x28] sm:$0xff]  ;;  %v345_v30 = vpack.c.bf16 %v333_v24, %v332_v23  ;;  %767 = vst [vmem:[#allocation11 + $0x18] sm:$0xff] %v733_v35   ;;  %v828_v38 = vld [vmem:[%s1003_s4] ss:$0 sm:$0xff] }
  0xe8   :  { %v340_v27 = vld [vmem:[#allocation2 + $0x78] sm:$0xff]  ;;  %v347_v31 = vpack.c.bf16 %v337_v26, %v336_v25  ;;  %768 = vst [vmem:[#allocation11 + $0x20] sm:$0xff] %v733_v35  }
  0xe9   :  { %420 = vmatpush.bf16.msra.mxu0 %v722_v3  ;;  %802 = vmatpush.bf16.msra.mxu1 %v722_v3  ;;  %v349_v32 = vpack.c.bf16 %v341_v28, %v340_v27  ;;  %769 = vst [vmem:[#allocation11 + $0x28] sm:$0xff] %v733_v35  }
  0xea   :  { %803 = vmatpush.bf16.msra.mxu2 %v722_v3  ;;  %804 = vmatpush.bf16.msra.mxu3 %v722_v3  ;;  %770 = vst [vmem:[#allocation11 + $0x30] sm:$0xff] %v733_v35  }
  0xeb   :  { %771 = vst [vmem:[#allocation11 + $0x38] sm:$0xff] %v733_v35  }
  0xed   :  { %421 = vmatpush.bf16.msra.mxu0 %v721_v4  ;;  %805 = vmatpush.bf16.msra.mxu1 %v721_v4 }
  0xee   :  { %806 = vmatpush.bf16.msra.mxu2 %v721_v4  ;;  %807 = vmatpush.bf16.msra.mxu3 %v721_v4 }
  0xf1   :  { %422 = vmatpush.bf16.msra.mxu0 %v720_v5  ;;  %808 = vmatpush.bf16.msra.mxu1 %v720_v5 }
  0xf2   :  { %809 = vmatpush.bf16.msra.mxu2 %v720_v5  ;;  %810 = vmatpush.bf16.msra.mxu3 %v720_v5 }
  0xf5   :  { %423 = vmatpush.bf16.msra.mxu0 %v719_v6  ;;  %811 = vmatpush.bf16.msra.mxu1 %v719_v6 }
  0xf6   :  { %812 = vmatpush.bf16.msra.mxu2 %v719_v6  ;;  %813 = vmatpush.bf16.msra.mxu3 %v719_v6 }
  0xf9   :  { %424 = vmatpush.bf16.msra.mxu0 %v718_v7  ;;  %814 = vmatpush.bf16.msra.mxu1 %v718_v7 }
  0xfa   :  { %815 = vmatpush.bf16.msra.mxu2 %v718_v7  ;;  %816 = vmatpush.bf16.msra.mxu3 %v718_v7 }
  0xfd   :  { %425 = vmatpush.bf16.msra.mxu0 %v717_v8  ;;  %817 = vmatpush.bf16.msra.mxu1 %v717_v8 }
  0xfe   :  { %818 = vmatpush.bf16.msra.mxu2 %v717_v8  ;;  %819 = vmatpush.bf16.msra.mxu3 %v717_v8 }
 0x100   :  { %426 = vmatmul.bf16.vlgmr.msra.gmra.mxu0 %v342_v17  ;;  %436 = vmatmul.bf16.vlgmr.msra.gmra.mxu1 %v344_v18 }
 0x101   :  { %446 = vmatmul.bf16.vlgmr.msra.gmra.mxu2 %v346_v19  ;;  %456 = vmatmul.bf16.vlgmr.msra.gmra.mxu3 %v348_v20 }
 0x110   :  { %431 = vmatmul.bf16.gmra.mxu0 %v343_v29  ;;  %441 = vmatmul.bf16.gmra.mxu1 %v345_v30 }
 0x111   :  { %451 = vmatmul.bf16.gmra.mxu2 %v347_v31  ;;  %461 = vmatmul.bf16.gmra.mxu3 %v349_v32 }
 0x17d   :  { %v427_v36 = vpop.f32.mrf.mxu0  ;;  %v437_v37 = vpop.f32.mrf.mxu1 }
 0x17e   :  { %v428_v39 = vadd.f32 %v828_v38, %v427_v36 }
 0x180   :  { %v467_v45 = vmax.f32 %v428_v39, 0.0 }
 0x184   :  { %v447_v40 = vpop.f32.mrf.mxu2  ;;  %v457_v41 = vpop.f32.mrf.mxu3 }
 0x185   :  { %v429_v42 = vpop.f32.mrf.mxu0  ;;  %v439_v43 = vpop.f32.mrf.mxu1 }
 0x186   :  { %v430_v44 = vadd.f32 %v828_v38, %v429_v42 }
 0x188   :  { %v468_v46 = vmax.f32 %v430_v44, 0.0 }
 0x18a   :  { %v728_v47 = vpack.c.bf16 %v468_v46, %v467_v45 }
 0x18c   :  { %729 = vst [vmem:[#allocation11] sm:$0xff] %v728_v47   ;;  %v449_v48 = vpop.f32.mrf.mxu2  ;;  %v459_v49 = vpop.f32.mrf.mxu3 }
 0x18d   :  { %v432_v50 = vpop.f32.mrf.mxu0  ;;  %v442_v51 = vpop.f32.mrf.mxu1  ;;  %594 = dma.vmem_to_hbm [thread:$0]  %s587_s11, 1024, %s589_s14, [#allocation7], %s932_s26, %s932_s26, %s933_s27  }
 0x194   :  { %v452_v52 = vpop.f32.mrf.mxu2  ;;  %v462_v53 = vpop.f32.mrf.mxu3 }
 0x195   :  { %v434_v54 = vpop.f32.mrf.mxu0  ;;  %v444_v55 = vpop.f32.mrf.mxu1 }
 0x19c   :  { %v454_v56 = vpop.f32.mrf.mxu2  ;;  %v464_v57 = vpop.f32.mrf.mxu3 }
 0x19d   :  { %929 = dma.done.wait [#allocation7], 1024  }
 0x19e   :  { %930 = vsyncadd [#allocation7], 4294966272 }
 0x19f   :  { %599 = vsyncpa [#allocation6], 1 }
 0x1a0   :  { %600 = vsyncpa [#allocation9], 1 }
 0x1a1   :  { %601 = vsyncpa [#allocation7], 1 }

</bundles_post_ra>
